<compile_context>
chip_gen: v7x
topology: tpu7x:2x2x1
jax: 0.10.0
libtpu: 0.0.40
codegen_flags: <defaults>
</compile_context>

<pallas_src>
import functools

import numpy as np
import jax
import jax.numpy as jnp
from jax import lax
from jax.experimental import pallas as pl
from jax.experimental.pallas import tpu as pltpu

NUM_PARALLEL = 8

# Row-tile sweep target.  Per-grid-step fixed overhead is ~0.35 us, so each
# step needs ~1 us of useful work; 2048 rows keeps live VMEM (bf16 x tile
# 256 KB + f32 intermediates a few MB) far below even v7x's 64 MiB while
# amortizing the step overhead 4-8x better than the old 512-row tiles.
_TARGET_TILE_ROWS = 2048


def _round_up(x, m):
    return ((x + m - 1) // m) * m


def _choose_tile_rows(n_rows):
    # Keep >=2 grid steps whenever the row count allows it so v7x's two
    # TensorCores both get work under dimension_semantics=("parallel",).
    # Tile is a multiple of 16 rows (bf16 sublane packing of the x tile).
    half = -(-n_rows // 2)
    return max(16, min(_TARGET_TILE_ROWS, _round_up(half, 16)))


def mixnet_kernel(x_ref, q_ref, wcat_ref, bcat_ref, wb_ref, bb_ref,
                  rep_ref, agg_ref, out_ref):
    AH, H = agg_ref.shape                      # A*H, H
    T = x_ref.shape[0]

    # Single fused MXU matmul (bf16 in, f32 accumulate) for all four x-driven
    # hypernet Linears.
    hcat = jnp.dot(x_ref[...], wcat_ref[...],
                   preferred_element_type=jnp.float32) + bcat_ref[...]  # (T, AH+3H)

    w1 = jnp.abs(hcat[:, :AH])                              # |hyper_net_weight_1|
    b1 = hcat[:, AH:AH + H]                                 # hyper_net_bias_1
    w2 = jnp.abs(hcat[:, AH + H:AH + 2 * H])                # |hyper_net_weight_2|
    h2 = jnp.maximum(hcat[:, AH + 2 * H:AH + 3 * H], 0.0)   # bias_2 hidden (ReLU)

    # Lane replication of q (A -> A*H lanes) on the MXU against a 0/1 constant
    # (instead of jnp.tile's XLU/VPU broadcast chain; the MXU has slack).
    q_rep = jnp.dot(q_ref[...].astype(jnp.bfloat16), rep_ref[...],
                    preferred_element_type=jnp.float32)      # (T, AH)
    prod = (w1 * q_rep).astype(jnp.bfloat16)
    # Per-row bmm: y[n, h] = sum_a w1[n, h*A + a] * q[n, a] via the constant
    # agg matrix (hidden-major flat layout) on the MXU.
    y = jnp.dot(prod, agg_ref[...], preferred_element_type=jnp.float32)  # (T, H)

    z = jnp.maximum(y + b1, 0.0)                             # (T, H)

    # Final per-row reductions as two tiny MXU dots that also transpose the
    # result into a lane-dense (1, T) row (no (T, 1) masked vst stores, no
    # explicit sublane->lane relayout).  This is the q @ k^T contraction
    # pattern: both operands contract their minor axis.
    dn = (((1,), (1,)), ((), ()))
    ones_row = jnp.ones((1, H), jnp.float32)
    s_main = lax.dot_general(ones_row, w2 * z, dn,
                             preferred_element_type=jnp.float32)   # (1, T)
    s_bias = lax.dot_general(wb_ref[...], h2, dn,
                             preferred_element_type=jnp.float32)   # (1, T)
    out_ref[...] = (s_main + s_bias + bb_ref[...]).reshape(1, 1, T)


@functools.lru_cache(maxsize=None)
def _agg_matrix(hidden_dim, n_agents):
    # agg[h*A + a, h] = 1 ; exact in bf16 (0/1), built once per (H, A).
    return np.repeat(np.eye(hidden_dim, dtype=np.float32), n_agents, axis=0)


@functools.lru_cache(maxsize=None)
def _rep_matrix(hidden_dim, n_agents):
    # rep[a, h*A + a'] = (a == a') ; q @ rep == tile(q, (1, H)).
    return np.tile(np.eye(n_agents, dtype=np.float32), (1, hidden_dim))


def pack_params(params):
    """Fuse the four x-driven hypernet Linears (bf16 weights, f32 biases) and
    reshape the final Linear for the in-kernel reduce. Call once."""
    wcat = jnp.concatenate(
        [params["w1"], params["wb1"], params["w2"], params["wa"]],
        axis=1).astype(jnp.bfloat16)
    bcat = jnp.concatenate(
        [params["b1"], params["bb1"], params["bw2"], params["ba"]], axis=1)
    return {
        "wcat": wcat,                 # (S, A*H + 3*H) bf16
        "bcat": bcat,                 # (1, A*H + 3*H) f32
        "wb_row": params["wb"].T,     # (1, H)         f32
        "bb": params["bb"],           # (1, 1)         f32
    }


def _mixnet_forward(q_values, observations, hidden, packed):
    """q_values: (B, P, A); observations: (B, A, P, O); hidden: (B, P, hx)."""
    B, A, P, O = observations.shape
    S = A * O
    N = B * P
    H = packed["wb_row"].shape[1]
    wout = packed["wcat"].shape[1]
    AH = A * H

    # state = observations.swapaxes(1, 2).view(B, P, A*O); the bf16 cast (and
    # the optional pad below) fuse into the same XLA copy, so the dominant
    # input costs 4(read)+2(write)+2(kernel read) bytes/elt instead of 12.
    x = jnp.swapaxes(observations, 1, 2).reshape(N, S).astype(jnp.bfloat16)
    q = q_values.reshape(N, A)

    agg = jnp.asarray(_agg_matrix(H, A), dtype=jnp.bfloat16)   # (A*H, H)
    rep = jnp.asarray(_rep_matrix(H, A), dtype=jnp.bfloat16)   # (A, A*H)

    tile_n = _choose_tile_rows(N)
    num_tiles = -(-N // tile_n)
    n_pad = tile_n * num_tiles
    if n_pad != N:
        x = jnp.pad(x, ((0, n_pad - N), (0, 0)))
        q = jnp.pad(q, ((0, n_pad - N), (0, 0)))
    grid = (num_tiles,)

    out = pl.pallas_call(
        mixnet_kernel,
        out_shape=jax.ShapeDtypeStruct((num_tiles, 1, tile_n), jnp.float32),
        grid=grid,
        in_specs=[
            pl.BlockSpec((tile_n, S), lambda i: (i, 0)),     # x     (streamed)
            pl.BlockSpec((tile_n, A), lambda i: (i, 0)),     # q     (streamed)
            pl.BlockSpec((S, wout), lambda i: (0, 0)),       # Wcat  (pinned)
            pl.BlockSpec((1, wout), lambda i: (0, 0)),       # bcat  (pinned)
            pl.BlockSpec((1, H), lambda i: (0, 0)),          # wb^T  (pinned)
            pl.BlockSpec((1, 1), lambda i: (0, 0)),          # bb    (pinned)
            pl.BlockSpec((A, AH), lambda i: (0, 0)),         # rep   (pinned)
            pl.BlockSpec((AH, H), lambda i: (0, 0)),         # agg   (pinned)
        ],
        out_specs=pl.BlockSpec((1, 1, tile_n), lambda i: (i, 0, 0)),
        compiler_params=pltpu.CompilerParams(
            dimension_semantics=("parallel",),
            vmem_limit_bytes=32 * 1024 * 1024),
    )(x, q, packed["wcat"], packed["bcat"], packed["wb_row"], packed["bb"],
      rep, agg)

    out = out.reshape(n_pad)[:N]
    return out.reshape(B, P, 1), hidden


mixnet_forward = jax.jit(_mixnet_forward)


def init_params(key, state_size, n_agents, hidden_dim):
    """Deterministic PyTorch-Linear-style init: U(-1/sqrt(fan_in), 1/sqrt(fan_in)).
    Weights stored as (in_features, out_features); biases as (1, out_features)."""
    def linear(k, fan_in, fan_out):
        kw, kb = jax.random.split(k)
        bound = 1.0 / np.sqrt(fan_in)
        w = jax.random.uniform(kw, (fan_in, fan_out), jnp.float32, -bound, bound)
        b = jax.random.uniform(kb, (1, fan_out), jnp.float32, -bound, bound)
        return w, b

    keys = jax.random.split(key, 5)
    w1, b1 = linear(keys[0], state_size, n_agents * hidden_dim)   # hyper_net_weight_1
    w2, bw2 = linear(keys[1], state_size, hidden_dim)             # hyper_net_weight_2
    wb1, bb1 = linear(keys[2], state_size, hidden_dim)            # hyper_net_bias_1
    wa, ba = linear(keys[3], state_size, hidden_dim)              # hyper_net_bias_2[0]
    wb, bb = linear(keys[4], hidden_dim, 1)                       # hyper_net_bias_2[2]
    return {"w1": w1, "b1": b1, "w2": w2, "bw2": bw2,
            "wb1": wb1, "bb1": bb1, "wa": wa, "ba": ba, "wb": wb, "bb": bb}


def reference_forward(q_values, observations, params, hidden_dim):
    """Pure-JAX f32 reference mirroring the PyTorch semantics (non-recurrent),
    using the UNPACKED params so it also validates the wrapper's fusion."""
    B, A, P, O = observations.shape
    S = A * O
    x = jnp.swapaxes(observations, 1, 2).reshape(B, P, S)
    w1 = jnp.abs(x @ params["w1"] + params["b1"]).reshape(B, P, hidden_dim, A)
    b1 = (x @ params["wb1"] + params["bb1"])[..., None]            # (B,P,H,1)
    w2 = jnp.abs(x @ params["w2"] + params["bw2"])                 # (B,P,H)
    h2 = jnp.maximum(x @ params["wa"] + params["ba"], 0.0)
    b2 = h2 @ params["wb"] + params["bb"]                          # (B,P,1)
    y = jnp.einsum("bpha,bpa->bph", w1, q_values)[..., None]       # (B,P,H,1)
    z = jnp.maximum(y + b1, 0.0)
    out = (w2[..., None] * z).sum(axis=2) + b2                     # (B,P,1)
    return out


def _run_case(key, batch, n_agents, obs_size, n_para, hidden_dim, hx_size,
              params, packed):
    k_obs, k_q = jax.random.split(key)
    observations = jax.random.normal(
        k_obs, (batch, n_agents, n_para, obs_size), jnp.float32)
    q_values = jax.random.normal(k_q, (batch, n_para, n_agents), jnp.float32)
    hidden = jnp.zeros((batch, n_para, hx_size), jnp.float32)  # init_hidden()

    out, hidden_out = mixnet_forward(q_values, observations, hidden, packed)
    out = jax.block_until_ready(out)
    hidden_out = jax.block_until_ready(hidden_out)

    ref = reference_forward(q_values, observations, params, hidden_dim)
    # bf16 MXU inputs (f32 accumulation): the final sum has no cancellation
    # (w2*z >= 0), so relative error stays ~1%; tolerance relaxed accordingly.
    np.testing.assert_allclose(np.asarray(out), np.asarray(ref),
                               rtol=3e-2, atol=3e-2)
    assert out.shape == (batch, n_para, 1)
    assert hidden_out.shape == (batch, n_para, hx_size)


if __name__ == "__main__":
    n_agents = 4
    obs_size = 16
    n_para = NUM_PARALLEL      # 8
    hidden_dim = 32
    hx_size = 64
    state_size = n_agents * obs_size  # 64

    key = jax.random.PRNGKey(0)
    k_par, k_case1, k_case2 = jax.random.split(key, 3)

    params = init_params(k_par, state_size, n_agents, hidden_dim)
    packed = pack_params(params)   # fuse hypernet weights once, outside forward

    # Small smoke-test shape (single grid step).
    _run_case(k_case1, 2, n_agents, obs_size, n_para, hidden_dim, hx_size,
              params, packed)
    # Larger shape exercising the multi-step grid + row-padding path.
    _run_case(k_case2, 37, n_agents, obs_size, n_para, hidden_dim, hx_size,
              params, packed)

    print("KERNEL_OK")
</pallas_src>

<mosaic_0001>
module attributes {stable_mosaic.version = 11 : i64} {
  func.func @mixnet_kernel(%arg0: i32, %arg1: memref<16x64xbf16, #tpu.memory_space<vmem>>, %arg2: memref<16x4xf32, #tpu.memory_space<vmem>>, %arg3: memref<64x224xbf16, #tpu.memory_space<vmem>>, %arg4: memref<1x224xf32, #tpu.memory_space<vmem>>, %arg5: memref<1x32xf32, #tpu.memory_space<vmem>>, %arg6: memref<1x1xf32, #tpu.memory_space<vmem>>, %arg7: memref<4x128xbf16, #tpu.memory_space<vmem>>, %arg8: memref<128x32xbf16, #tpu.memory_space<vmem>>, %arg9: memref<1x1x16xf32, #tpu.memory_space<vmem>>) attributes {dimension_semantics = [#tpu.dimension_semantics<parallel>], iteration_bounds = array<i64: 1>, scalar_prefetch = 0 : i64, scratch_operands = 0 : i64, tpu.core_type = #tpu.core_type<tc>, window_params = [{transform_indices = @transform_0, window_bounds = array<i64: 16, 64>}, {transform_indices = @transform_1, window_bounds = array<i64: 16, 4>}, {pipeline_mode = #tpu.pipeline_mode<synchronous>, transform_indices = @transform_2, window_bounds = array<i64: 64, 224>}, {pipeline_mode = #tpu.pipeline_mode<synchronous>, transform_indices = @transform_3, window_bounds = array<i64: 1, 224>}, {pipeline_mode = #tpu.pipeline_mode<synchronous>, transform_indices = @transform_4, window_bounds = array<i64: 1, 32>}, {pipeline_mode = #tpu.pipeline_mode<synchronous>, transform_indices = @transform_5, window_bounds = array<i64: 1, 1>}, {pipeline_mode = #tpu.pipeline_mode<synchronous>, transform_indices = @transform_6, window_bounds = array<i64: 4, 128>}, {pipeline_mode = #tpu.pipeline_mode<synchronous>, transform_indices = @transform_7, window_bounds = array<i64: 128, 32>}, {transform_indices = @transform_8, window_bounds = array<i64: 1, 1, 16>}]} {
    %c0 = arith.constant 0 : index
    %c0_0 = arith.constant 0 : index
    %0 = vector.load %arg1[%c0, %c0_0] : memref<16x64xbf16, #tpu.memory_space<vmem>>, vector<16x64xbf16>
    %c0_1 = arith.constant 0 : index
    %c0_2 = arith.constant 0 : index
    %1 = vector.load %arg3[%c0_1, %c0_2] : memref<64x224xbf16, #tpu.memory_space<vmem>>, vector<64x224xbf16>
    %cst = arith.constant dense<0.000000e+00> : vector<16x224xf32>
    %2 = tpu.matmul %0, %1, %cst {dimension_numbers = #tpu.dot_dimension_numbers<[1], [0], [0], [1], [0, 0, 1, 1], [], []>} : vector<16x64xbf16>, vector<64x224xbf16>, vector<16x224xf32> -> vector<16x224xf32>
    %c0_3 = arith.constant 0 : index
    %c0_4 = arith.constant 0 : index
    %3 = vector.load %arg4[%c0_3, %c0_4] : memref<1x224xf32, #tpu.memory_space<vmem>>, vector<1x224xf32>
    %4 = vector.broadcast %3 : vector<1x224xf32> to vector<16x224xf32>
    %5 = arith.addf %2, %4 : vector<16x224xf32>
    %6 = vector.extract_strided_slice %5 {offsets = [0, 0], sizes = [16, 128], strides = [1, 1]} : vector<16x224xf32> to vector<16x128xf32>
    %7 = math.absf %6 : vector<16x128xf32>
    %8 = vector.extract_strided_slice %5 {offsets = [0, 128], sizes = [16, 32], strides = [1, 1]} : vector<16x224xf32> to vector<16x32xf32>
    %9 = vector.extract_strided_slice %5 {offsets = [0, 160], sizes = [16, 32], strides = [1, 1]} : vector<16x224xf32> to vector<16x32xf32>
    %10 = math.absf %9 : vector<16x32xf32>
    %11 = vector.extract_strided_slice %5 {offsets = [0, 192], sizes = [16, 32], strides = [1, 1]} : vector<16x224xf32> to vector<16x32xf32>
    %cst_5 = arith.constant 0.000000e+00 : f32
    %12 = vector.broadcast %cst_5 : f32 to vector<16x32xf32>
    %13 = arith.maximumf %11, %12 : vector<16x32xf32>
    %c0_6 = arith.constant 0 : index
    %c0_7 = arith.constant 0 : index
    %14 = vector.load %arg2[%c0_6, %c0_7] : memref<16x4xf32, #tpu.memory_space<vmem>>, vector<16x4xf32>
    %15 = arith.truncf %14 : vector<16x4xf32> to vector<16x4xbf16>
    %c0_8 = arith.constant 0 : index
    %c0_9 = arith.constant 0 : index
    %16 = vector.load %arg7[%c0_8, %c0_9] : memref<4x128xbf16, #tpu.memory_space<vmem>>, vector<4x128xbf16>
    %cst_10 = arith.constant dense<0.000000e+00> : vector<16x128xf32>
    %17 = tpu.matmul %15, %16, %cst_10 {dimension_numbers = #tpu.dot_dimension_numbers<[1], [0], [0], [1], [0, 0, 1, 1], [], []>} : vector<16x4xbf16>, vector<4x128xbf16>, vector<16x128xf32> -> vector<16x128xf32>
    %18 = arith.mulf %7, %17 : vector<16x128xf32>
    %19 = arith.truncf %18 : vector<16x128xf32> to vector<16x128xbf16>
    %c0_11 = arith.constant 0 : index
    %c0_12 = arith.constant 0 : index
    %20 = vector.load %arg8[%c0_11, %c0_12] : memref<128x32xbf16, #tpu.memory_space<vmem>>, vector<128x32xbf16>
    %cst_13 = arith.constant dense<0.000000e+00> : vector<16x32xf32>
    %21 = tpu.matmul %19, %20, %cst_13 {dimension_numbers = #tpu.dot_dimension_numbers<[1], [0], [0], [1], [0, 0, 1, 1], [], []>} : vector<16x128xbf16>, vector<128x32xbf16>, vector<16x32xf32> -> vector<16x32xf32>
    %22 = arith.addf %21, %8 : vector<16x32xf32>
    %cst_14 = arith.constant 0.000000e+00 : f32
    %23 = vector.broadcast %cst_14 : f32 to vector<16x32xf32>
    %24 = arith.maximumf %22, %23 : vector<16x32xf32>
    %cst_15 = arith.constant 1.000000e+00 : f32
    %25 = vector.broadcast %cst_15 : f32 to vector<1x32xf32>
    %26 = arith.mulf %10, %24 : vector<16x32xf32>
    %cst_16 = arith.constant dense<0.000000e+00> : vector<1x16xf32>
    %27 = tpu.matmul %25, %26, %cst_16 {dimension_numbers = #tpu.dot_dimension_numbers<[1], [1], [0], [0], [0, 0, 1, 0], [], []>} : vector<1x32xf32>, vector<16x32xf32>, vector<1x16xf32> -> vector<1x16xf32>
    %c0_17 = arith.constant 0 : index
    %c0_18 = arith.constant 0 : index
    %28 = vector.load %arg5[%c0_17, %c0_18] : memref<1x32xf32, #tpu.memory_space<vmem>>, vector<1x32xf32>
    %cst_19 = arith.constant dense<0.000000e+00> : vector<1x16xf32>
    %29 = tpu.matmul %28, %13, %cst_19 {dimension_numbers = #tpu.dot_dimension_numbers<[1], [1], [0], [0], [0, 0, 1, 0], [], []>} : vector<1x32xf32>, vector<16x32xf32>, vector<1x16xf32> -> vector<1x16xf32>
    %30 = arith.addf %27, %29 : vector<1x16xf32>
    %c0_20 = arith.constant 0 : index
    %c0_21 = arith.constant 0 : index
    %31 = vector.load %arg6[%c0_20, %c0_21] : memref<1x1xf32, #tpu.memory_space<vmem>>, vector<1x1xf32>
    %32 = vector.broadcast %31 : vector<1x1xf32> to vector<1x16xf32>
    %33 = arith.addf %30, %32 : vector<1x16xf32>
    %34 = vector.shape_cast %33 : vector<1x16xf32> to vector<1x1x16xf32>
    %c0_22 = arith.constant 0 : index
    %c0_23 = arith.constant 0 : index
    %c0_24 = arith.constant 0 : index
    %35 = vector.load %arg9[%c0_22, %c0_23, %c0_24] : memref<1x1x16xf32, #tpu.memory_space<vmem>>, vector<1x1x16xf32>
    tpu.vector_store %arg9[%c0_22, %c0_23, %c0_24], %34 {strides = array<i32>} : memref<1x1x16xf32, #tpu.memory_space<vmem>>, vector<1x1x16xf32>,
    return
  }
  func.func @transform_0(%arg0: i32) -> (i32, i32) {
    %c0_i32 = arith.constant 0 : i32
    %c0_i32_0 = arith.constant 0 : i32
    return %arg0, %c0_i32 : i32, i32
  }
  func.func @transform_1(%arg0: i32) -> (i32, i32) {
    %c0_i32 = arith.constant 0 : i32
    %c0_i32_0 = arith.constant 0 : i32
    return %arg0, %c0_i32 : i32, i32
  }
  func.func @transform_2(%arg0: i32) -> (i32, i32) {
    %c0_i32 = arith.constant 0 : i32
    %c0_i32_0 = arith.constant 0 : i32
    %c0_i32_1 = arith.constant 0 : i32
    return %c0_i32, %c0_i32_0 : i32, i32
  }
  func.func @transform_3(%arg0: i32) -> (i32, i32) {
    %c0_i32 = arith.constant 0 : i32
    %c0_i32_0 = arith.constant 0 : i32
    %c0_i32_1 = arith.constant 0 : i32
    return %c0_i32, %c0_i32_0 : i32, i32
  }
  func.func @transform_4(%arg0: i32) -> (i32, i32) {
    %c0_i32 = arith.constant 0 : i32
    %c0_i32_0 = arith.constant 0 : i32
    %c0_i32_1 = arith.constant 0 : i32
    return %c0_i32, %c0_i32_0 : i32, i32
  }
  func.func @transform_5(%arg0: i32) -> (i32, i32) {
    %c0_i32 = arith.constant 0 : i32
    %c0_i32_0 = arith.constant 0 : i32
    %c0_i32_1 = arith.constant 0 : i32
    return %c0_i32, %c0_i32_0 : i32, i32
  }
  func.func @transform_6(%arg0: i32) -> (i32, i32) {
    %c0_i32 = arith.constant 0 : i32
    %c0_i32_0 = arith.constant 0 : i32
    %c0_i32_1 = arith.constant 0 : i32
    return %c0_i32, %c0_i32_0 : i32, i32
  }
  func.func @transform_7(%arg0: i32) -> (i32, i32) {
    %c0_i32 = arith.constant 0 : i32
    %c0_i32_0 = arith.constant 0 : i32
    %c0_i32_1 = arith.constant 0 : i32
    return %c0_i32, %c0_i32_0 : i32, i32
  }
  func.func @transform_8(%arg0: i32) -> (i32, i32, i32) {
    %c0_i32 = arith.constant 0 : i32
    %c0_i32_0 = arith.constant 0 : i32
    %c0_i32_1 = arith.constant 0 : i32
    return %arg0, %c0_i32, %c0_i32_0 : i32, i32, i32
  }
}

</mosaic_0001>

<bundles_post_ra>
// kernel: _mixnet_forward.1
= control target key start
LH: loop header
LB: loop body
LE: loop exit
PB: predicated region body
PF: predicated region fallthrough
CT: control target
= control target key end

     0   :  { %v640_v1 = vmov 0.0   ;;  %v641_v2 = vmov 0   ;;  %vm642_vm0 = vmmov 0   ;;  %vm160_vm1 = vcmask 1041408   ;;  %s802_s2 = inlined_call_operand.vmem [shape: bf16[64,224], index: 2, kind: input, shape index: {}]   ;;  %s803_s6 = inlined_call_operand.vmem [shape: bf16[4,128], index: 6, kind: input, shape index: {}]   ;;  %s804_s1 = inlined_call_operand.vmem [shape: f32[16,4], index: 1, kind: input, shape index: {}]   ;;  %s805_s0 = inlined_call_operand.vmem [shape: bf16[16,64], index: 0, kind: input, shape index: {}]   ;;  %s806_s7 = inlined_call_operand.vmem [shape: bf16[128,32], index: 7, kind: input, shape index: {}]   ;;  %s807_s3 = inlined_call_operand.vmem [shape: f32[1,224], index: 3, kind: input, shape index: {}]   ;;  %s808_s4 = inlined_call_operand.vmem [shape: f32[1,32], index: 4, kind: input, shape index: {}]   ;;  %s809_s5 = inlined_call_operand.<no memory space> [shape: f32[1,1], index: 5, kind: input, shape index: {}]   ;;  %s810_s8 = inlined_call_operand.vmem [shape: f32[1,1,16], index: 8, kind: output, shape index: {}]  }
   0x1   :  { %v619_v0 = vld [vmem:[%s802_s2 + $0x4] ss:$8 sps:$4 sm:$0xff]   ;;  %552 = vmatprep.subr.bf16.mxu1 %v640_v1  ;;  %135 = vmatprep.mubr.bf16.mxu0 %v641_v2  ;;  %v621_v3 = vld [vmem:[%s802_s2] ss:$8 sps:$4 sm:$0xff]   ;;  %v622_v4 = vld [vmem:[%s802_s2 + $0x14] ss:$8 sps:$4 sm:$0xff]   ;;  %v44_v24 = vlaneseq }
   0x2   :  { %554 = vmatprep.mubr.msk.bf16.mxu1 %vm642_vm0, %v640_v1  ;;  %618 = vset.pattern.permute.xlu0 %v641_v2  ;;  %v624_v5 = vld [vmem:[%s802_s2 + $0x10] ss:$8 sps:$4 sm:$0xff]   ;;  %v625_v6 = vld [vmem:[%s802_s2 + $0x24] ss:$8 sps:$4 sm:$0xff]   ;;  %v627_v7 = vld [vmem:[%s802_s2 + $0x20] ss:$8 sps:$4 sm:$0xff]  }
   0x3   :  { %103 = vmatprep.subr.bf16.mxu0 %v619_v0  ;;  %v155_v8 = vld [vmem:[%s803_s6] sm:$0x3]  ;;  %v628_v9 = vld [vmem:[%s802_s2 + $0x34] ss:$8 sps:$4 sm:$0xff]   ;;  %v153_v12 = vld [vmem:[%s804_s1 + $0x8] sm:$0xff]  ;;  %vm156_vm2 = vcmask 31744  }
   0x4   :  { %104 = vmatpush1.bf16.msra.mxu0 %v621_v3  ;;  %v162_v10 = vsel %vm160_vm1, %v155_v8, 0  ;;  %v152_v11 = vld [vmem:[%s804_s1] sm:$0xff]  ;;  %v630_v15 = vld [vmem:[%s802_s2 + $0x30] ss:$8 sps:$4 sm:$0xff]   ;;  %v633_v16 = vld [vmem:[%s806_s7 + $0x8] sm:$0xff]   ;;  %vm99_vm3 = vcmask 523264  }
   0x5   :  { %105 = vmatprep.subr.bf16.mxu0 %v622_v4  ;;  %553 = vmatpush3.bf16.msra.mxu1 %v162_v10  ;;  %v154_v13 = vpack.c.bf16 %v153_v12, %v152_v11  ;;  %v632_v14 = vld [vmem:[%s806_s7] sm:$0xff]   ;;  %v634_v18 = vld [vmem:[%s806_s7 + $0x10] sm:$0xff]   ;;  %v635_v19 = vld [vmem:[%s806_s7 + $0x18] sm:$0xff]   ;;  %v768_v25 = vshrl.u32 %v44_v24, 7  ;;  %v643_v36 = vmov 0.0|0.0   ;;  %vm332_vm4 = vcmask 261120  }
   0x6   :  { %558 = vmatprep.subr.bf16.mxu1 %v640_v1  ;;  %v631_v17 = vld [vmem:[%s805_s0] sm:$0xff]   ;;  %v637_v21 = vld [vmem:[%s806_s7 + $0x28] sm:$0xff]   ;;  %v638_v22 = vld [vmem:[%s806_s7 + $0x30] sm:$0xff]   ;;  %v13_v10 = vstv %s809_s5  ;;  %s646_s6 = smov 96   ;;  %vm504_vm6 = vcmask 122880  }
   0x7   :  { %v636_v20 = vld [vmem:[%s806_s7 + $0x20] sm:$0xff]   ;;  %v639_v23 = vld [vmem:[%s806_s7 + $0x38] sm:$0xff]   ;;  %v46_v27 = vsub.s32 0, %v768_v25  ;;  %v50_v30 = vsub.s32 1, %v768_v25  ;;  %vm779_vm5 = vmpackc.low %vm332_vm4, %vm332_vm4  ;;  %s645_s7 = smov 32  }
   0x8   :  { %106 = vmatpush1.bf16.msra.mxu0 %v624_v5  ;;  %555 = vmatmul.mubr.msk.bf16.vlgmr.msra.gmra.mrb[0].mxu1 %vm156_vm2, %v154_v13  ;;  %v42_v29 = vld [vmem:[%s807_s3] sm:$0x3]  ;;  %s644_s3 = smov 64   ;;  %14 = vst [vmem:[#allocation2] sm:$0x1] %v13_v10 }
   0x9   :  { %107 = vmatprep.subr.bf16.mxu0 %v625_v6  ;;  %559 = vmatpush3.bf16.msra.mxu1 %v632_v14  ;;  %v47_v33 = vrot.slane %v42_v29, %v46_v27  ;;  %v51_v34 = vrot.slane %v42_v29, %v50_v30  ;;  %v325_v2 = vld [vmem:[%s808_s4] sm:$0x1] }
   0xa   :  { %560 = vmatprep.subr.bf16.mxu1 %v640_v1  ;;  %574 = vmatprep.mubr.msk.bf16.mxu1 %vm642_vm0, %v640_v1 }
   0xc   :  { %108 = vmatpush1.bf16.msra.mxu0 %v627_v7 }
   0xd   :  { %109 = vmatprep.subr.bf16.mxu0 %v628_v9  ;;  %561 = vmatpush3.bf16.msra.mxu1 %v633_v16 }
   0xe   :  { %562 = vmatprep.subr.bf16.mxu1 %v640_v1 }
   0xf   :  { %v493_v11 = vld [vmem:[#allocation2] sm:$0x1] }
  0x10   :  { %110 = vmatpush1.bf16.msra.mxu0 %v630_v15 }
  0x11   :  { %563 = vmatpush3.bf16.msra.mxu1 %v634_v18  ;;  %592 = vmatprep.subr.bf16.mxu0 %v643_v36 }
  0x12   :  { %564 = vmatprep.subr.bf16.mxu1 %v640_v1 }
  0x13   :  { %519 = vmatmul.mubr.msk.bf16.vlgmr.msra.gmra.mrb[0].mxu0 %vm99_vm3, %v631_v17 }
  0x14   :  { %582 = vmatprep.mubr.msk.f32.mxu0 %vm642_vm0, %v640_v1 }
  0x15   :  { %565 = vmatpush3.bf16.msra.mxu1 %v635_v19 }
  0x16   :  { %566 = vmatprep.subr.bf16.mxu1 %v640_v1 }
  0x19   :  { %567 = vmatpush3.bf16.msra.mxu1 %v636_v20 }
  0x1a   :  { %568 = vmatprep.subr.bf16.mxu1 %v640_v1 }
  0x1d   :  { %569 = vmatpush3.bf16.msra.mxu1 %v637_v21 }
  0x1e   :  { %570 = vmatprep.subr.bf16.mxu1 %v640_v1 }
  0x21   :  { %571 = vmatpush3.bf16.msra.mxu1 %v638_v22 }
  0x22   :  { %572 = vmatprep.subr.bf16.mxu1 %v640_v1 }
  0x25   :  { %573 = vmatpush3.bf16.msra.mxu1 %v639_v23 }
  0xdb   :  { %v198_v26 = vpop.f32.mrb[0].mxu1 }
  0xdc   :  { %v556_v28 = vpop.f32.mrb[1].mxu1 }
  0xdd   :  { %v201_v31 = vpop.f32.mrb[2].mxu1 }
  0xde   :  { %v557_v32 = vpop.f32.mrb[3].mxu1 }
  0xe6   :  { %v137_v35 = vpop.f32.mrb[0].mxu0 }
  0xe7   :  { %v138_v37 = vadd.f32 %v137_v35, %v47_v33  ;;  %v139_v38 = vpop.f32.mrb[1].mxu0 }
  0xe8   :  { %v140_v39 = vadd.f32 %v139_v38, %v51_v34  ;;  %v141_v40 = vpop.f32.mrb[2].mxu0 }
  0xe9   :  { %v146_v41 = vand.u32 2147483647, %v138_v37  ;;  %v142_v42 = vadd.f32 %v141_v40, %v47_v33  ;;  %v143_v43 = vpop.f32.mrb[3].mxu0 }
  0xea   :  { %v144_v44 = vadd.f32 %v143_v43, %v51_v34  ;;  %v150_v47 = vmax.f32 %v140_v39, 0.0  ;;  %v148_v4 = vand.u32 2147483647, %v140_v39 }
  0xeb   :  { %v205_v45 = vmul.f32 %v198_v26, %v146_v41  ;;  %v147_v46 = vand.u32 2147483647, %v142_v42 }
  0xec   :  { %v151_v48 = vmax.f32 %v144_v44, 0.0  ;;  %v149_v5 = vand.u32 2147483647, %v144_v44 }
  0xed   :  { %v206_v49 = vmul.f32 %v201_v31, %v147_v46 }
  0xee   :  { %v608_v50 = vpack.i.bf16 %v151_v48, %v150_v47 }
  0xef   :  { %v207_v51 = vpack.c.bf16 %v206_v49, %v205_v45 }
  0xf0   :  { %609 = vrot.lane.b32.xlu1 %v608_v50, %s644_s3 }
  0xf1   :  { %575 = vmatmul.mubr.bf16.vlgmr.msra.gmra.mrb[4].mxu1 %v207_v51 }
 0x162   :  { %v610_v52 = vpop.permute.xlu1 %609 }
 0x163   :  { %v612_v53 = vunpack.i.h.bf16 %v610_v52  ;;  %v611_v54 = vunpack.i.l.bf16 %v610_v52 }
 0x165   :  { %v593_v56 = vpack.c.bf16 %v612_v53, %v611_v54 }
 0x167   :  { %595 = vmatpush3.bf16.xpose.msk.msra.mxu0 %vm779_vm5, %v593_v56 }
 0x168   :  { %596 = vmatprep.subr.bf16.mxu0 %v643_v36 }
 0x16e   :  { %583 = vmatmul.mubr.msk.f32.vlgmr.msra.gmra.mrb[4].mxu0 %vm332_vm4, %v325_v2 }
 0x16f   :  { %589 = vmatprep.mubr.msk.f32.mxu0 %vm642_vm0, %v640_v1  ;;  %v647_v1 = vmov 1.0  }
 0x1c4   :  { %v306_v57 = vpop.f32.mrb[4].mxu1 }
 0x1c5   :  { %v307_v58 = vadd.f32 %v306_v57, %v140_v39  ;;  %v576_v59 = vpop.f32.mrb[5].mxu1 }
 0x1c6   :  { %v309_v60 = vpop.f32.mrb[6].mxu1 }
 0x1c7   :  { %v313_v61 = vmax.f32 %v307_v58, 0.0  ;;  %v310_v62 = vadd.f32 %v309_v60, %v144_v44  ;;  %v577_v63 = vpop.f32.mrb[7].mxu1 }
 0x1c9   :  { %317 = vrot.lane.b32.xlu0 %v313_v61, %s645_s7  ;;  %v314_v0 = vmax.f32 %v310_v62, 0.0 }
 0x1cd   :  { %319 = vrot.lane.b32.xlu0 %v314_v0, %s645_s7 }
 0x1d1   :  { %496 = vperm.xlu0 %618, %v493_v11  }
 0x23b   :  { %v318_v3 = vpop.permute.xlu0 %317 }
 0x23c   :  { %v323_v7 = vmul.f32 %v318_v3, %v148_v4 }
 0x23f   :  { %v320_v6 = vpop.permute.xlu0 %319 }
 0x240   :  { %v324_v8 = vmul.f32 %v320_v6, %v149_v5 }
 0x241   :  { %v406_v16 = vpop.f32.mrb[4].mxu0 }
 0x242   :  { %v613_v9 = vpack.i.bf16 %v324_v8, %v323_v7  ;;  %v584_v17 = vpop.f32.mrb[5].mxu0 }
 0x244   :  { %614 = vrot.lane.b32.xlu1 %v613_v9, %s646_s6 }
 0x250   :  { %v497_v18 = vpop.permute.xlu0 %496 }
 0x251   :  { %v502_v19 = vrot.slane %v497_v18, %v46_v27 }
 0x2b6   :  { %v615_v12 = vpop.permute.xlu1 %614 }
 0x2b7   :  { %v617_v13 = vunpack.i.h.bf16 %v615_v12  ;;  %v616_v14 = vunpack.i.l.bf16 %v615_v12 }
 0x2b9   :  { %v597_v15 = vpack.c.bf16 %v617_v13, %v616_v14 }
 0x2bb   :  { %599 = vmatpush3.bf16.xpose.msk.msra.mxu0 %vm779_vm5, %v597_v15 }
 0x2c2   :  { %590 = vmatmul.mubr.msk.f32.vlgmr.msra.gmra.mrb[6].mxu0 %vm332_vm4, %v647_v1 }
 0x395   :  { %v489_v20 = vpop.f32.mrb[6].mxu0 }
 0x396   :  { %v490_v21 = vadd.f32 %v489_v20, %v406_v16  ;;  %v591_v22 = vpop.f32.mrb[7].mxu0 }
 0x398   :  { %v503_v23 = vadd.f32 %v502_v19, %v490_v21 }
 0x39a   :  { %505 = vst.msk [vmem:[%s810_s8] sm:$0x1] %vm504_vm6, %v503_v23 }

</bundles_post_ra>
